<compile_context>
chip_gen: v6e
topology: v6e:2x2x1
jax: 0.10.0
libtpu: 0.0.40
codegen_flags: <defaults>
</compile_context>

<pallas_src>
import functools

import jax
import jax.numpy as jnp
from jax.experimental import pallas as pl
from jax.experimental.pallas import tpu as pltpu


_MAX_BLOCK_COLS = 4096      # lane-dim tile cap (multiple of 128)
_SUBLANE = 8
_ROW_ALIGN = 32             # covers f32(8) / bf16(16) / int8(32) sublane tiles


def _round_up(x, m):
    return ((x + m - 1) // m) * m


def _round_down(x, m):
    return (x // m) * m


def _tpu_params():
    """Generation-aware knobs: (core_splits, per-input tile bytes, vmem cap)."""
    vmem_cap = None
    try:
        vmem_cap = getattr(pltpu.get_tpu_info(), "vmem_capacity_bytes", None)
    except Exception:
        vmem_cap = None
    if vmem_cap is None:
        # Unknown backend: conservative settings that are safe everywhere.
        return 1, 8 * 1024 * 1024, 64 * 1024 * 1024
    if vmem_cap <= 96 * 1024 * 1024:
        # v7x-like: 64 MiB VMEM per TensorCore, 2 TensorCores per chip.
        return 2, 4 * 1024 * 1024, 48 * 1024 * 1024
    # v5e / v6e: 128 MiB VMEM, single TensorCore -> bigger tiles, no split.
    return 1, 12 * 1024 * 1024, 100 * 1024 * 1024


def _focal_loss_kernel(x_ref, t_ref, out_ref, *, gamma, block_rows, block_cols,
                       blocks_per_split, total_row_blocks, full_rows, rem_cols,
                       need_mask, has_tail):
    c = pl.program_id(0)     # core split      ('parallel')
    j = pl.program_id(1)     # column block    ('parallel')
    i = pl.program_id(2)     # row block       ('arbitrary' / reduction)
    blk = c * blocks_per_split + i

    # Output block (c, 0, j) is constant across i -> resident VMEM accumulator.
    @pl.when(i == 0)
    def _():
        out_ref[...] = jnp.zeros_like(out_ref)

    def compute():
        x = x_ref[...].astype(jnp.float32)
        t = t_ref[...].astype(jnp.float32)

        # Numerically stable BCE-with-logits (matches PyTorch):
        #   bce = max(x, 0) - x*t + log(1 + exp(-|x|))
        bce = jnp.maximum(x, 0.0) - x * t + jnp.log1p(jnp.exp(-jnp.abs(x)))
        pt = jnp.exp(-bce)

        q = 1.0 - pt
        g = float(gamma)
        if g.is_integer() and 0.0 <= g <= 8.0:
            # Integer power -> repeated multiply: avoids pow (exp+log on the
            # single EUP slot) and NaN from pow of a tiny negative base.
            w = jnp.ones_like(q)
            for _ in range(int(g)):
                w = w * q
        else:
            w = jnp.power(jnp.maximum(q, 0.0), g)
        focal = w * bce

        # Zero out padded / overhanging tail elements (compiled out when the
        # shapes tile evenly).
        if need_mask:
            rows = blk * block_rows + jax.lax.broadcasted_iota(
                jnp.int32, focal.shape, 0)
            mask = rows < full_rows
            if rem_cols:
                cols = j * block_cols + jax.lax.broadcasted_iota(
                    jnp.int32, focal.shape, 1)
                mask = mask | ((rows == full_rows) & (cols < rem_cols))
            focal = jnp.where(mask, focal, 0.0)

        # Reduce (block_rows, block_cols) -> (8, block_cols) with pure vreg
        # adds; the single expensive cross-lane reduce happens in the wrapper.
        if block_rows % _SUBLANE:
            pad_r = _SUBLANE - block_rows % _SUBLANE   # only for tiny full-dim blocks
            focal = jnp.concatenate(
                [focal, jnp.zeros((pad_r, block_cols), focal.dtype)], axis=0)
        partial = focal.reshape(-1, _SUBLANE, block_cols).sum(axis=0)
        out_ref[...] += partial[jnp.newaxis]

    if has_tail:
        # Skip the duplicated (index-clamped) tail block on the last split:
        # its DMA is already elided (same block index), now skip the compute.
        pl.when(blk < total_row_blocks)(compute)
    else:
        compute()


def focal_loss(logits, targets, gamma=2, alpha=None, reduction="mean",
               pos_weight=None):
    """Focal loss matching the PyTorch module (scalar alpha or None)."""
    if pos_weight is not None:
        # TODO(synk): pos_weight-scaled BCE term not implemented.
        raise NotImplementedError("pos_weight is not supported")
    if reduction not in ("mean", "sum"):
        # TODO(synk): reduction='none' (elementwise output) not implemented.
        raise NotImplementedError("only reduction in ('mean', 'sum')")
    if alpha is not None and jnp.ndim(alpha) != 0:
        # TODO(synk): per-class / per-element alpha not implemented.
        raise NotImplementedError("only scalar alpha is supported")
    assert logits.shape == targets.shape

    n_elems = 1
    for d in logits.shape:
        n_elems *= d
    if n_elems == 0:
        raise ValueError("empty input")

    num_splits, tile_bytes_target, vmem_cap = _tpu_params()

    # ---- choose a lane-dense 2-D layout (keep native narrow dtypes) --------
    if logits.ndim >= 2 and logits.shape[-1] % 128 == 0:
        # Already lane dense: collapse leading dims (layout-free reshape).
        D = logits.shape[-1]
        x2 = logits.reshape(-1, D)
        t2 = targets.reshape(-1, D)
        R = x2.shape[0]
        # Largest 128-multiple <= cap that divides D -> no column masking.
        block_cols = 128
        for k in range(min(D, _MAX_BLOCK_COLS) // 128, 0, -1):
            if D % (128 * k) == 0:
                block_cols = 128 * k
                break
        col_blocks = D // block_cols
        full_rows, rem_cols = R, 0
    else:
        # Repack into a lane-dense (R, C) slab. For unaligned shapes this
        # costs one extra pass over the data but recovers lane / DMA / store
        # efficiency inside the (bandwidth-bound) kernel.
        x1 = logits.reshape(-1)
        t1 = targets.reshape(-1)
        C = 0
        for k in range(_MAX_BLOCK_COLS // 128, 0, -1):
            if n_elems % (8 * 128 * k) == 0:      # C divides n and R % 8 == 0
                C = 128 * k
                break
        if C:
            R = n_elems // C
            x2 = x1.reshape(R, C)
            t2 = t1.reshape(R, C)
            full_rows, rem_cols = R, 0
        else:
            C = max(128, _round_down(min(_MAX_BLOCK_COLS,
                                         pl.cdiv(n_elems, 8)), 128))
            R = _round_up(pl.cdiv(n_elems, C), 8)
            pad = R * C - n_elems
            x2 = jnp.pad(x1, (0, pad)).reshape(R, C)
            t2 = jnp.pad(t1, (0, pad)).reshape(R, C)
            full_rows, rem_cols = n_elems // C, n_elems % C
        block_cols, col_blocks = C, 1

    # ---- row tiling (generation-aware VMEM budget) --------------------------
    bytes_per_row = block_cols * (jnp.dtype(logits.dtype).itemsize +
                                  jnp.dtype(targets.dtype).itemsize)
    rows_target = max(_ROW_ALIGN,
                      _round_down(2 * tile_bytes_target // bytes_per_row,
                                  _ROW_ALIGN))
    block_rows = min(rows_target, R)
    total_row_blocks = pl.cdiv(R, block_rows)
    if num_splits > 1 and total_row_blocks < 2:
        num_splits = 1                      # no point splitting a single block
    blocks_per_split = pl.cdiv(total_row_blocks, num_splits)
    has_tail = (num_splits * blocks_per_split != total_row_blocks)
    need_mask = (total_row_blocks * block_rows != full_rows) or (rem_cols != 0)

    # 2 pipeline buffers per input + resident output slab + slack.
    in_tile_bytes = block_rows * bytes_per_row
    out_bytes = num_splits * 8 * col_blocks * block_cols * 4
    vmem_limit = int(min(vmem_cap,
                         max(32 * 1024 * 1024,
                             2 * in_tile_bytes + out_bytes + 4 * 1024 * 1024)))

    kernel = functools.partial(
        _focal_loss_kernel, gamma=float(gamma),
        block_rows=block_rows, block_cols=block_cols,
        blocks_per_split=blocks_per_split, total_row_blocks=total_row_blocks,
        full_rows=full_rows, rem_cols=rem_cols,
        need_mask=need_mask, has_tail=has_tail)

    last_blk = total_row_blocks - 1

    def in_map(c, j, i):
        # Clamp keeps a possible duplicate tail block on the last core split
        # in bounds; Pallas skips its re-DMA and the kernel skips its compute.
        return (jnp.minimum(c * blocks_per_split + i, last_blk), j)

    partials = pl.pallas_call(
        kernel,
        out_shape=jax.ShapeDtypeStruct(
            (num_splits, 8, col_blocks * block_cols), jnp.float32),
        grid_spec=pltpu.PrefetchScalarGridSpec(
            num_scalar_prefetch=0,
            grid=(num_splits, col_blocks, blocks_per_split),
            in_specs=[
                pl.BlockSpec((block_rows, block_cols), in_map),
                pl.BlockSpec((block_rows, block_cols), in_map),
            ],
            out_specs=pl.BlockSpec((1, 8, block_cols),
                                   lambda c, j, i: (c, 0, j)),
        ),
        compiler_params=pltpu.CompilerParams(
            # TODO(synk): on v7x, consider pltpu.CORE_PARALLEL on axis 0 if a
            # profile shows plain 'parallel' not engaging both TensorCores.
            dimension_semantics=("parallel", "parallel", "arbitrary"),
            vmem_limit_bytes=vmem_limit,
        ),
    )(x2, t2)

    total = jnp.sum(partials)                 # single small final reduce
    out = total / jnp.float32(n_elems) if reduction == "mean" else total
    if alpha is not None:
        # Scalar alpha: alpha * focal then mean/sum == alpha * (mean/sum).
        out = jnp.asarray(alpha, jnp.float32) * out
    return out


def focal_loss_reference(logits, targets, gamma=2, alpha=None):
    x = logits.astype(jnp.float32)
    t = targets.astype(jnp.float32)
    bce = jnp.maximum(x, 0.0) - x * t + jnp.log1p(jnp.exp(-jnp.abs(x)))
    pt = jnp.exp(-bce)
    focal = (1.0 - pt) ** gamma * bce
    if alpha is not None:
        focal = alpha * focal
    return jnp.mean(focal)


if __name__ == "__main__":
    key = jax.random.PRNGKey(0)
    k1, k2, k3, k4 = jax.random.split(key, 4)

    # Multi-label classification style inputs: (batch, num_classes).
    N, D = 16, 128
    logits = jax.random.normal(k1, (N, D), dtype=jnp.float32) * 2.0
    targets = jax.random.bernoulli(k2, p=0.3, shape=(N, D)).astype(jnp.float32)

    loss = jax.block_until_ready(focal_loss(logits, targets, gamma=2))
    ref = focal_loss_reference(logits, targets, gamma=2)
    assert jnp.allclose(loss, ref, rtol=1e-4, atol=1e-6), (loss, ref)

    # bf16 inputs stay bf16 through the DMA pipeline (upcast in-kernel only).
    xb = logits.astype(jnp.bfloat16)
    tb = targets.astype(jnp.bfloat16)
    loss_bf16 = jax.block_until_ready(focal_loss(xb, tb, gamma=2, alpha=0.25))
    ref_bf16 = focal_loss_reference(xb, tb, gamma=2, alpha=0.25)
    assert jnp.allclose(loss_bf16, ref_bf16, rtol=1e-4, atol=1e-6), (loss_bf16, ref_bf16)

    # Ragged shape with soft labels (exercises the lane-dense repack + mask).
    N2, D2 = 20, 100
    logits2 = jax.random.normal(k3, (N2, D2), dtype=jnp.float32) * 2.0
    targets2 = jax.random.uniform(k4, (N2, D2), dtype=jnp.float32)
    loss2 = jax.block_until_ready(focal_loss(logits2, targets2, gamma=2))
    ref2 = focal_loss_reference(logits2, targets2, gamma=2)
    assert jnp.allclose(loss2, ref2, rtol=1e-4, atol=1e-6), (loss2, ref2)

    print("KERNEL_OK")
</pallas_src>

<mosaic_0001>
module attributes {stable_mosaic.version = 11 : i64} {
  func.func @_focal_loss_kernel(%arg0: i32, %arg1: i32, %arg2: i32, %arg3: memref<16x128xf32, #tpu.memory_space<vmem>>, %arg4: memref<16x128xf32, #tpu.memory_space<vmem>>, %arg5: memref<1x8x128xf32, #tpu.memory_space<vmem>>) attributes {dimension_semantics = [#tpu.dimension_semantics<parallel>, #tpu.dimension_semantics<parallel>, #tpu.dimension_semantics<arbitrary>], iteration_bounds = array<i64: 1, 1, 1>, scalar_prefetch = 0 : i64, scratch_operands = 0 : i64, tpu.core_type = #tpu.core_type<tc>, window_params = [{transform_indices = @transform_0, window_bounds = array<i64: 16, 128>}, {transform_indices = @transform_1, window_bounds = array<i64: 16, 128>}, {transform_indices = @transform_2, window_bounds = array<i64: 1, 8, 128>}]} {
    %c0_i32 = arith.constant 0 : i32
    %0 = arith.cmpi eq, %arg2, %c0_i32 : i32
    %1 = arith.extui %0 : i1 to i32
    %c0_i32_0 = arith.constant 0 : i32
    %2 = arith.cmpi ne, %1, %c0_i32_0 : i32
    scf.if %2 {
      %cst_15 = arith.constant 0.000000e+00 : f32
      %30 = vector.broadcast %cst_15 : f32 to vector<1x8x128xf32>
      %c0_16 = arith.constant 0 : index
      %c0_17 = arith.constant 0 : index
      %c0_18 = arith.constant 0 : index
      %31 = vector.load %arg5[%c0_16, %c0_17, %c0_18] : memref<1x8x128xf32, #tpu.memory_space<vmem>>, vector<1x8x128xf32>
      tpu.vector_store %arg5[%c0_16, %c0_17, %c0_18], %30 {strides = array<i32>} : memref<1x8x128xf32, #tpu.memory_space<vmem>>, vector<1x8x128xf32>,
    } else {
    }
    %c0 = arith.constant 0 : index
    %c0_1 = arith.constant 0 : index
    %3 = vector.load %arg3[%c0, %c0_1] : memref<16x128xf32, #tpu.memory_space<vmem>>, vector<16x128xf32>
    %c0_2 = arith.constant 0 : index
    %c0_3 = arith.constant 0 : index
    %4 = vector.load %arg4[%c0_2, %c0_3] : memref<16x128xf32, #tpu.memory_space<vmem>>, vector<16x128xf32>
    %cst = arith.constant 0.000000e+00 : f32
    %5 = vector.broadcast %cst : f32 to vector<16x128xf32>
    %6 = arith.maximumf %3, %5 : vector<16x128xf32>
    %7 = arith.mulf %3, %4 : vector<16x128xf32>
    %8 = arith.subf %6, %7 : vector<16x128xf32>
    %9 = math.absf %3 : vector<16x128xf32>
    %cst_4 = arith.constant 0.000000e+00 : f32
    %10 = vector.broadcast %cst_4 : f32 to vector<16x128xf32>
    %11 = arith.subf %10, %9 : vector<16x128xf32>
    %12 = math.exp %11 : vector<16x128xf32>
    %13 = math.log1p %12 : vector<16x128xf32>
    %14 = arith.addf %8, %13 : vector<16x128xf32>
    %cst_5 = arith.constant 0.000000e+00 : f32
    %15 = vector.broadcast %cst_5 : f32 to vector<16x128xf32>
    %16 = arith.subf %15, %14 : vector<16x128xf32>
    %17 = math.exp %16 : vector<16x128xf32>
    %cst_6 = arith.constant 1.000000e+00 : f32
    %18 = vector.broadcast %cst_6 : f32 to vector<16x128xf32>
    %19 = arith.subf %18, %17 : vector<16x128xf32>
    %cst_7 = arith.constant 1.000000e+00 : f32
    %20 = vector.broadcast %cst_7 : f32 to vector<16x128xf32>
    %21 = arith.mulf %20, %19 : vector<16x128xf32>
    %22 = arith.mulf %21, %19 : vector<16x128xf32>
    %23 = arith.mulf %22, %14 : vector<16x128xf32>
    %24 = vector.shape_cast %23 : vector<16x128xf32> to vector<2x8x128xf32>
    %cst_8 = arith.constant dense<0.000000e+00> : vector<8x128xf32>
    %25 = vector.multi_reduction <add>, %24, %cst_8 [0] : vector<2x8x128xf32> to vector<8x128xf32>
    %c0_9 = arith.constant 0 : index
    %c0_10 = arith.constant 0 : index
    %c0_11 = arith.constant 0 : index
    %26 = vector.load %arg5[%c0_9, %c0_10, %c0_11] : memref<1x8x128xf32, #tpu.memory_space<vmem>>, vector<1x8x128xf32>
    %27 = vector.shape_cast %25 : vector<8x128xf32> to vector<1x8x128xf32>
    %28 = arith.addf %26, %27 : vector<1x8x128xf32>
    %c0_12 = arith.constant 0 : index
    %c0_13 = arith.constant 0 : index
    %c0_14 = arith.constant 0 : index
    %29 = vector.load %arg5[%c0_12, %c0_13, %c0_14] : memref<1x8x128xf32, #tpu.memory_space<vmem>>, vector<1x8x128xf32>
    tpu.vector_store %arg5[%c0_12, %c0_13, %c0_14], %28 {strides = array<i32>} : memref<1x8x128xf32, #tpu.memory_space<vmem>>, vector<1x8x128xf32>,
    return
  }
  func.func @transform_0(%arg0: i32, %arg1: i32, %arg2: i32) -> (i32, i32) {
    %c1_i32 = arith.constant 1 : i32
    %0 = arith.muli %arg0, %c1_i32 : i32
    %1 = arith.addi %0, %arg2 : i32
    %c0_i32 = arith.constant 0 : i32
    %2 = arith.minsi %1, %c0_i32 : i32
    %c0_i32_0 = arith.constant 0 : i32
    return %2, %arg1 : i32, i32
  }
  func.func @transform_1(%arg0: i32, %arg1: i32, %arg2: i32) -> (i32, i32) {
    %c1_i32 = arith.constant 1 : i32
    %0 = arith.muli %arg0, %c1_i32 : i32
    %1 = arith.addi %0, %arg2 : i32
    %c0_i32 = arith.constant 0 : i32
    %2 = arith.minsi %1, %c0_i32 : i32
    %c0_i32_0 = arith.constant 0 : i32
    return %2, %arg1 : i32, i32
  }
  func.func @transform_2(%arg0: i32, %arg1: i32, %arg2: i32) -> (i32, i32, i32) {
    %c0_i32 = arith.constant 0 : i32
    %c0_i32_0 = arith.constant 0 : i32
    return %arg0, %c0_i32, %arg1 : i32, i32, i32
  }
}

</mosaic_0001>

<bundles_post_ra>
// kernel: tpu_custom_call.1
= control target key start
LH: loop header
LB: loop body
LE: loop exit
PB: predicated region body
PF: predicated region fallthrough
CT: control target
= control target key end

     0   :  { %7 = vsyncpa [#allocation3], 0  ;;  %s252_s0 = inlined_call_operand.hbm [shape: f32[16,128], index: 0, kind: input, shape index: {}]   ;;  %s253_s1 = inlined_call_operand.hbm [shape: f32[16,128], index: 1, kind: input, shape index: {}]   ;;  %s254_s2 = inlined_call_operand.hbm [shape: f32[1,8,128], index: 2, kind: output, shape index: {}]  }
   0x1   :  { %8 = vsyncpa [#allocation6], 0 }
   0x2   :  { %9 = vsyncpa [#allocation4], 0  ;;  %s223_s9 = smov [#allocation2]  }
   0x3   :  { %s21_s10 = sshll.u32 %s223_s9, 4  ;;  %s22_s10 = int_to_ptr.vmem [resolvable:$true] %s21_s10 }
   0x4   :  { %s165_s11 = scalar_lea.vmem %s22_s10, 256  ;;  %p170_p1 = scmp.lt.s32.totalorder %s22_s10, %s22_s10 }
   0x5   :  { %p166_p0 = scmp.ne.s32.totalorder %s22_s10, %s165_s11  ;;  %p171_p2 = scmp.lt.s32.totalorder %s165_s11, %s165_s11 }
   0x7   :  { %p172_p3 = por %p171_p2, %p170_p1 }
   0x9   :  { %p173_p4 = pnand %p172_p3, %p166_p0 }
   0xb   :  { %176 = shalt.err (!%p173_p4)
}
   0xc   :  { %s224_s12 = smov 128   ;;  %s225_s13 = smov 8  }
   0xd   :  { %27 = dma.hbm_to_vmem [thread:$0]  %s252_s0, 256, %s22_s10, [#allocation3], %s224_s12, %s224_s12, %s225_s13  }
   0xe   :  { %s226_s16 = smov [#allocation5]  }
   0xf   :  { %s39_s17 = sshll.u32 %s226_s16, 4  ;;  %s40_s17 = int_to_ptr.vmem [resolvable:$true] %s39_s17 }
  0x10   :  { %s185_s18 = scalar_lea.vmem %s40_s17, 256  ;;  %p190_p6 = scmp.lt.s32.totalorder %s40_s17, %s40_s17 }
  0x11   :  { %p186_p5 = scmp.ne.s32.totalorder %s40_s17, %s185_s18  ;;  %p191_p7 = scmp.lt.s32.totalorder %s185_s18, %s185_s18 }
  0x13   :  { %p192_p8 = por %p191_p7, %p190_p6 }
  0x15   :  { %p193_p9 = pnand %p192_p8, %p186_p5 }
  0x17   :  { %196 = shalt.err (!%p193_p9)
}
  0x18   :  { %45 = dma.hbm_to_vmem [thread:$0]  %s253_s1, 256, %s40_s17, [#allocation6], %s224_s12, %s224_s12, %s225_s13  }
  0x19   :  { %217 = dma.done.wait [#allocation3], 256  }
  0x1a   :  { %218 = vsyncadd [#allocation3], 4294967040 }
  0x1b   :  { %219 = dma.done.wait [#allocation6], 256  }
  0x1c   :  { %220 = vsyncadd [#allocation6], 4294967040  ;;  %v65_v0 = vld [vmem:[#allocation2] sm:$0xff]  ;;  %v66_v1 = vld [vmem:[#allocation2 + $0x8] sm:$0xff]  ;;  %s227_s0 = smov [#allocation7]  }
  0x1d   :  { %v75_v2 = vand.u32 2147483647, %v65_v0  ;;  %v76_v3 = vand.u32 2147483647, %v66_v1  ;;  %v67_v14 = vld [vmem:[#allocation5] sm:$0xff]  ;;  %v68_v15 = vld [vmem:[#allocation5 + $0x8] sm:$0xff] }
  0x1e   :  { %v69_v17 = vmax.f32 %v65_v0, 0.0  ;;  %v71_v18 = vmul.f32 %v67_v14, %v65_v0  ;;  %v70_v21 = vmax.f32 %v66_v1, 0.0  ;;  %v72_v22 = vmul.f32 %v68_v15, %v66_v1  ;;  %s125_s1 = sshll.u32 %s227_s0, 4  ;;  %s126_s1 = int_to_ptr.vmem [resolvable:$true] %s125_s1 }
  0x1f   :  { %v77_v4 = vsub.f32 0.0, %v75_v2  ;;  %v78_v5 = vsub.f32 0.0, %v76_v3  ;;  %s197_s21 = scalar_lea.vmem %s126_s1, 128  ;;  %p202_p11 = scmp.lt.s32.totalorder %s126_s1, %s126_s1 }
  0x20   :  { %v73_v26 = vsub.f32 %v69_v17, %v71_v18  ;;  %v74_v29 = vsub.f32 %v70_v21, %v72_v22  ;;  %p198_p10 = scmp.ne.s32.totalorder %s126_s1, %s197_s21  ;;  %p203_p12 = scmp.lt.s32.totalorder %s197_s21, %s197_s21 }
  0x21   :  { %v79_v6 = vmul.f32 1.442695, %v77_v4  ;;  %v81_v7 = vmul.f32 1.442695, %v78_v5 }
  0x22   :  { %p204_p13 = por %p203_p12, %p202_p11 }
  0x23   :  { %145 = vpow2.f32 %v79_v6 }
  0x24   :  { %147 = vpow2.f32 %v81_v7  ;;  %p205_p0 = pnand %p204_p13, %p198_p10 }
  0x30   :  { %v146_v8 = vpop.eup %145 }
  0x31   :  { %v148_v9 = vpop.eup %147  ;;  %v83_v10 = vadd.f32 1.0, %v146_v8  ;;  %v86_v12 = vmul.f32 -0.5, %v146_v8  ;;  %v89_v19 = vand.u32 2147483647, %v146_v8 }
  0x32   :  { %v92_v11 = vadd.f32 1.0, %v148_v9  ;;  %v95_v13 = vmul.f32 -0.5, %v148_v9  ;;  %v98_v23 = vand.u32 2147483647, %v148_v9 }
  0x33   :  { %149 = vlog2.f32 %v83_v10  ;;  %v87_v16 = vadd.f32 1.0, %v86_v12  ;;  %vm90_vm0 = vcmp.lt.f32.partialorder %v89_v19, 0.0004427343 }
  0x34   :  { %151 = vlog2.f32 %v92_v11  ;;  %v96_v20 = vadd.f32 1.0, %v95_v13  ;;  %vm99_vm1 = vcmp.lt.f32.partialorder %v98_v23, 0.0004427343 }
  0x35   :  { %v88_v24 = vmul.f32 %v146_v8, %v87_v16 }
  0x36   :  { %v97_v27 = vmul.f32 %v148_v9, %v96_v20 }
  0x40   :  { %v150_v25 = vpop.eup %149 }
  0x41   :  { %v152_v28 = vpop.eup %151  ;;  %v85_v30 = vmul.f32 0.6931472, %v150_v25 }
  0x42   :  { %v94_v31 = vmul.f32 0.6931472, %v152_v28 }
  0x43   :  { %v91_v32 = vsel %vm90_vm0, %v88_v24, %v85_v30 }
  0x44   :  { %v100_v33 = vsel %vm99_vm1, %v97_v27, %v94_v31  ;;  %v101_v34 = vadd.f32 %v91_v32, %v73_v26 }
  0x45   :  { %v102_v35 = vadd.f32 %v100_v33, %v74_v29 }
  0x46   :  { %v103_v36 = vsub.f32 0.0, %v101_v34 }
  0x47   :  { %v104_v37 = vsub.f32 0.0, %v102_v35 }
  0x48   :  { %v105_v38 = vmul.f32 1.442695, %v103_v36 }
  0x49   :  { %v107_v39 = vmul.f32 1.442695, %v104_v37 }
  0x4a   :  { %153 = vpow2.f32 %v105_v38 }
  0x4b   :  { %155 = vpow2.f32 %v107_v39 }
  0x57   :  { %v154_v40 = vpop.eup %153 }
  0x58   :  { %v156_v41 = vpop.eup %155  ;;  %v109_v42 = vsub.f32 1.0, %v154_v40 }
  0x59   :  { %v110_v43 = vsub.f32 1.0, %v156_v41 }
  0x5a   :  { %v111_v44 = vmul.f32 %v109_v42, %v109_v42 }
  0x5b   :  { %v112_v45 = vmul.f32 %v110_v43, %v110_v43 }
  0x5c   :  { %v113_v46 = vmul.f32 %v111_v44, %v101_v34 }
  0x5d   :  { %v114_v47 = vmul.f32 %v112_v45, %v102_v35 }
  0x5f   :  { %v115_v48 = vadd.f32 %v114_v47, %v113_v46 }
  0x61   :  { %118 = vst [vmem:[#allocation7] sm:$0xff] %v115_v48 }
  0x62   :  { %208 = shalt.err (!%p205_p0)
}
  0x63   :  { %128 = dma.vmem_to_hbm [thread:$0]  %s126_s1, 128, %s254_s2, [#allocation4]  }
  0x64   :  { %221 = dma.done.wait [#allocation4], 128  }
  0x65   :  { %222 = vsyncadd [#allocation4], 4294967168 }
  0x66   :  { %132 = vsyncpa [#allocation3], 1 }
  0x67   :  { %133 = vsyncpa [#allocation6], 1 }
  0x68   :  { %134 = vsyncpa [#allocation4], 1 }

</bundles_post_ra>
